<compile_context>
chip_gen: v5e
topology: v5e:2x2
jax: 0.10.0
libtpu: 0.0.40
codegen_flags: <defaults>
</compile_context>

<pallas_src>
import functools

import jax
import jax.numpy as jnp
from jax.experimental import pallas as pl
from jax.experimental.pallas import tpu as pltpu


def _dwsep_fused_kernel(x_ref, wf_ref, mask_ref, o_ref, *,
                        H, W, C, Cout, K, dil, pad, images_per_block, compute_dtype):
    # x_ref   : (Bblk, C, H*W)     lane-dense input chunk (f32, unpadded)
    # wf_ref  : (Cout, K*K*C)      fused depthwise*pointwise weights (compute_dtype)
    # mask_ref: (K*K, H*W)         per-tap validity masks (0/1, f32)
    # o_ref   : (Bblk, Cout, H*W)  lane-dense output chunk
    L = H * W
    for b in range(images_per_block):
        x_img = x_ref[b]                                   # (C, L) f32
        rows = []
        for kh in range(K):
            for kw in range(K):
                t = kh * K + kw
                dh = kh * dil - pad
                dw = kw * dil - pad
                if dh == 0 and dw == 0:
                    rows.append(x_img)                     # center tap: no shift, all valid
                else:
                    off = dh * W + dw
                    # tap[l] = x_img[l + off] on valid lanes (XLU lane rotation), zeros where
                    # the tap would fall outside the image (== the conv's zero padding).
                    tap = pltpu.roll(x_img, shift=(-off) % L, axis=1)
                    rows.append(tap * mask_ref[pl.ds(t, 1), :])
        # (K*K*C, L) im2col slab; row order (kh, kw, c) matches the fused-weight layout.
        # Each piece is C=8 f32 sublanes -> the concat is vreg placement, no lane moves.
        slab = jnp.concatenate(rows, axis=0).astype(compute_dtype)
        # Single MXU matmul per image: (Cout, K*K*C) @ (K*K*C, L), f32 accumulation.
        y = jnp.dot(wf_ref[...], slab, preferred_element_type=jnp.float32)
        o_ref[b] = y.astype(o_ref.dtype)


def depthwise_separable_conv(x_nchw, dw_weight, pw_weight, *, dilation=1,
                             compute_dtype=jnp.bfloat16, out_dtype=None,
                             num_batch_blocks=None):
    """Matches the PyTorch module:
         nn.Conv2d(C, C, K, stride=1, padding=(1 if dilation==1 else dilation),
                   dilation=dilation, groups=C, bias=False)
         followed by nn.Conv2d(C, Cout, kernel_size=1, bias=False).
       x_nchw: (N, C, H, W); dw_weight: (C, 1, K, K); pw_weight: (Cout, C, 1, 1)."""
    N, C, H, W = x_nchw.shape
    K = dw_weight.shape[-1]
    Cout = pw_weight.shape[0]
    assert K == 3, "padding rule (1 if dilation==1 else dilation) only preserves H,W for K=3"
    pad = 1 if dilation == 1 else dilation
    out_dtype = x_nchw.dtype if out_dtype is None else out_dtype
    L = H * W

    # --- one-time wrapper-side prep ----------------------------------------------------
    # Fused weights: wf[co, (kh*K + kw)*C + c] = pw[co, c] * dw[c, 0, kh, kw]
    dw_khkwc = jnp.transpose(dw_weight[:, 0], (1, 2, 0))                  # (K, K, C)
    pw_coc = pw_weight[:, :, 0, 0]                                        # (Cout, C)
    wf = (pw_coc[:, None, None, :] * dw_khkwc[None]).reshape(Cout, K * K * C)
    wf = wf.astype(compute_dtype)

    # Per-tap validity masks on the flattened H*W lane axis. A tap rolled by (dh*W + dw)
    # reads x[h+dh, w+dw]; lanes where that leaves the image must be zeroed (they are
    # exactly the zero-padding of the original conv), which also stops row wrap-around.
    hh = jnp.arange(H)
    ww = jnp.arange(W)
    mask_rows = []
    for kh in range(K):
        for kw in range(K):
            dh = kh * dilation - pad
            dw = kw * dilation - pad
            ok_h = (hh + dh >= 0) & (hh + dh < H)
            ok_w = (ww + dw >= 0) & (ww + dw < W)
            mask_rows.append((ok_h[:, None] & ok_w[None, :]).reshape(L))
    masks = jnp.stack(mask_rows, axis=0).astype(jnp.float32)              # (K*K, H*W)

    # Lane-dense, unpadded input (free reshape). Keep taps 32-bit for the in-kernel rotate.
    x_flat = x_nchw.reshape(N, C, L).astype(jnp.float32)

    # Batch chunking: fuse images into a grid step to amortize per-step overhead. Default 2
    # blocks keeps both v7x TensorCores busy; pass 1 on v5e/v6e (single TC) tiny batches.
    if num_batch_blocks is None:
        num_batch_blocks = 2 if N >= 2 else 1
    ipb = pl.cdiv(N, num_batch_blocks)                                    # images per block
    n_pad = ipb * num_batch_blocks
    if n_pad != N:
        x_flat = jnp.pad(x_flat, ((0, n_pad - N), (0, 0), (0, 0)))

    # TODO(synk): for large H*W, tile the grid over rows (grid=(batch_blocks, H//tile_h))
    # with a halo-aware roll/mask per row tile, sizing tile_h so slab + double-buffered
    # input + f32 accum stays ~16 MiB on v7x (64 MiB VMEM) vs ~32 MiB on v5e/v6e (128 MiB),
    # and set vmem_limit_bytes via pltpu.CompilerParams. At these sizes one image is tiny.

    kernel = functools.partial(_dwsep_fused_kernel, H=H, W=W, C=C, Cout=Cout, K=K,
                               dil=dilation, pad=pad, images_per_block=ipb,
                               compute_dtype=compute_dtype)

    out = pl.pallas_call(
        kernel,
        out_shape=jax.ShapeDtypeStruct((n_pad, Cout, L), out_dtype),
        grid=(num_batch_blocks,),
        in_specs=[
            pl.BlockSpec((ipb, C, L), lambda g: (g, 0, 0)),
            pl.BlockSpec((Cout, K * K * C), lambda g: (0, 0)),   # weights stay VMEM-resident
            pl.BlockSpec((K * K, L), lambda g: (0, 0)),          # masks stay VMEM-resident
        ],
        out_specs=pl.BlockSpec((ipb, Cout, L), lambda g: (g, 0, 0)),
        compiler_params=pltpu.CompilerParams(dimension_semantics=("parallel",)),
    )(x_flat, wf, masks)

    # (n_pad, Cout, H*W) -> (N, Cout, H, W): slice + free row-major reshape, already NCHW.
    return out[:N].reshape(N, Cout, H, W)


def _reference(x, dw_weight, pw_weight, dilation):
    C = x.shape[1]
    pad = 1 if dilation == 1 else dilation
    y = jax.lax.conv_general_dilated(
        x, dw_weight, window_strides=(1, 1),
        padding=[(pad, pad), (pad, pad)],
        rhs_dilation=(dilation, dilation),
        dimension_numbers=("NCHW", "OIHW", "NCHW"),
        feature_group_count=C,
        precision=jax.lax.Precision.HIGHEST)
    y = jax.lax.conv_general_dilated(
        y, pw_weight, window_strides=(1, 1), padding="VALID",
        dimension_numbers=("NCHW", "OIHW", "NCHW"),
        precision=jax.lax.Precision.HIGHEST)
    return y


if __name__ == "__main__":
    # Small, module-consistent shapes: batch=2, inplanes=8, outplanes=16, spatial=16, K=3.
    N, Cin, Cout, H, W, K = 2, 8, 16, 16, 16, 3

    key = jax.random.PRNGKey(0)
    kx, kd, kp = jax.random.split(key, 3)
    x = jax.random.normal(kx, (N, Cin, H, W), dtype=jnp.float32)
    dw_weight = jax.random.normal(kd, (Cin, 1, K, K), dtype=jnp.float32) * 0.1    # depthwise
    pw_weight = jax.random.normal(kp, (Cout, Cin, 1, 1), dtype=jnp.float32) * 0.1  # 1x1

    # bf16-operand MXU path, dilation=1 (padding=1 branch), default 2 batch blocks (v7x TCs).
    out_bf16 = jax.block_until_ready(
        depthwise_separable_conv(x, dw_weight, pw_weight, dilation=1))
    ref1 = jax.block_until_ready(_reference(x, dw_weight, pw_weight, 1))
    assert out_bf16.shape == (N, Cout, H, W), out_bf16.shape
    assert jnp.allclose(out_bf16, ref1, atol=5e-2, rtol=5e-2), \
        float(jnp.max(jnp.abs(out_bf16 - ref1)))

    # f32-operand path, dilated branch (dilation=2, padding=2), whole batch in one grid step.
    out_f32 = jax.block_until_ready(
        depthwise_separable_conv(x, dw_weight, pw_weight, dilation=2,
                                 compute_dtype=jnp.float32, num_batch_blocks=1))
    ref2 = jax.block_until_ready(_reference(x, dw_weight, pw_weight, 2))
    assert out_f32.shape == (N, Cout, H, W), out_f32.shape
    assert jnp.allclose(out_f32, ref2, atol=1e-3, rtol=1e-3), \
        float(jnp.max(jnp.abs(out_f32 - ref2)))

    print("KERNEL_OK")
</pallas_src>

<mosaic_0001>
module attributes {stable_mosaic.version = 11 : i64} {
  func.func @_dwsep_fused_kernel(%arg0: i32, %arg1: memref<1x8x256xf32, #tpu.memory_space<vmem>>, %arg2: memref<16x72xbf16, #tpu.memory_space<vmem>>, %arg3: memref<9x256xf32, #tpu.memory_space<vmem>>, %arg4: memref<1x16x256xf32, #tpu.memory_space<vmem>>) attributes {dimension_semantics = [#tpu.dimension_semantics<parallel>], iteration_bounds = array<i64: 2>, scalar_prefetch = 0 : i64, scratch_operands = 0 : i64, tpu.core_type = #tpu.core_type<tc>, window_params = [{transform_indices = @transform_0, window_bounds = array<i64: 1, 8, 256>}, {pipeline_mode = #tpu.pipeline_mode<synchronous>, transform_indices = @transform_1, window_bounds = array<i64: 16, 72>}, {pipeline_mode = #tpu.pipeline_mode<synchronous>, transform_indices = @transform_2, window_bounds = array<i64: 9, 256>}, {transform_indices = @transform_3, window_bounds = array<i64: 1, 16, 256>}]} {
    %c0 = arith.constant 0 : index
    %c0_0 = arith.constant 0 : index
    %c0_1 = arith.constant 0 : index
    %0 = vector.load %arg1[%c0, %c0_0, %c0_1] : memref<1x8x256xf32, #tpu.memory_space<vmem>>, vector<1x8x256xf32>
    %1 = vector.shape_cast %0 : vector<1x8x256xf32> to vector<8x256xf32>
    %c17_i32 = arith.constant 17 : i32
    %2 = tpu.dynamic_rotate %1 by %c17_i32 dim 1 : vector<8x256xf32>, i32 -> vector<8x256xf32>
    %c0_2 = arith.constant 0 : index
    %c0_3 = arith.constant 0 : index
    %3 = vector.load %arg3[%c0_2, %c0_3] : memref<9x256xf32, #tpu.memory_space<vmem>>, vector<1x256xf32>
    %4 = vector.broadcast %3 : vector<1x256xf32> to vector<8x256xf32>
    %5 = arith.mulf %2, %4 : vector<8x256xf32>
    %c16_i32 = arith.constant 16 : i32
    %6 = tpu.dynamic_rotate %1 by %c16_i32 dim 1 : vector<8x256xf32>, i32 -> vector<8x256xf32>
    %c1 = arith.constant 1 : index
    %c0_4 = arith.constant 0 : index
    %7 = vector.load %arg3[%c1, %c0_4] : memref<9x256xf32, #tpu.memory_space<vmem>>, vector<1x256xf32>
    %8 = vector.broadcast %7 : vector<1x256xf32> to vector<8x256xf32>
    %9 = arith.mulf %6, %8 : vector<8x256xf32>
    %c15_i32 = arith.constant 15 : i32
    %10 = tpu.dynamic_rotate %1 by %c15_i32 dim 1 : vector<8x256xf32>, i32 -> vector<8x256xf32>
    %c2 = arith.constant 2 : index
    %c0_5 = arith.constant 0 : index
    %11 = vector.load %arg3[%c2, %c0_5] : memref<9x256xf32, #tpu.memory_space<vmem>>, vector<1x256xf32>
    %12 = vector.broadcast %11 : vector<1x256xf32> to vector<8x256xf32>
    %13 = arith.mulf %10, %12 : vector<8x256xf32>
    %c1_i32 = arith.constant 1 : i32
    %14 = tpu.dynamic_rotate %1 by %c1_i32 dim 1 : vector<8x256xf32>, i32 -> vector<8x256xf32>
    %c3 = arith.constant 3 : index
    %c0_6 = arith.constant 0 : index
    %15 = vector.load %arg3[%c3, %c0_6] : memref<9x256xf32, #tpu.memory_space<vmem>>, vector<1x256xf32>
    %16 = vector.broadcast %15 : vector<1x256xf32> to vector<8x256xf32>
    %17 = arith.mulf %14, %16 : vector<8x256xf32>
    %c255_i32 = arith.constant 255 : i32
    %18 = tpu.dynamic_rotate %1 by %c255_i32 dim 1 : vector<8x256xf32>, i32 -> vector<8x256xf32>
    %c5 = arith.constant 5 : index
    %c0_7 = arith.constant 0 : index
    %19 = vector.load %arg3[%c5, %c0_7] : memref<9x256xf32, #tpu.memory_space<vmem>>, vector<1x256xf32>
    %20 = vector.broadcast %19 : vector<1x256xf32> to vector<8x256xf32>
    %21 = arith.mulf %18, %20 : vector<8x256xf32>
    %c241_i32 = arith.constant 241 : i32
    %22 = tpu.dynamic_rotate %1 by %c241_i32 dim 1 : vector<8x256xf32>, i32 -> vector<8x256xf32>
    %c6 = arith.constant 6 : index
    %c0_8 = arith.constant 0 : index
    %23 = vector.load %arg3[%c6, %c0_8] : memref<9x256xf32, #tpu.memory_space<vmem>>, vector<1x256xf32>
    %24 = vector.broadcast %23 : vector<1x256xf32> to vector<8x256xf32>
    %25 = arith.mulf %22, %24 : vector<8x256xf32>
    %c240_i32 = arith.constant 240 : i32
    %26 = tpu.dynamic_rotate %1 by %c240_i32 dim 1 : vector<8x256xf32>, i32 -> vector<8x256xf32>
    %c7 = arith.constant 7 : index
    %c0_9 = arith.constant 0 : index
    %27 = vector.load %arg3[%c7, %c0_9] : memref<9x256xf32, #tpu.memory_space<vmem>>, vector<1x256xf32>
    %28 = vector.broadcast %27 : vector<1x256xf32> to vector<8x256xf32>
    %29 = arith.mulf %26, %28 : vector<8x256xf32>
    %c239_i32 = arith.constant 239 : i32
    %30 = tpu.dynamic_rotate %1 by %c239_i32 dim 1 : vector<8x256xf32>, i32 -> vector<8x256xf32>
    %c8 = arith.constant 8 : index
    %c0_10 = arith.constant 0 : index
    %31 = vector.load %arg3[%c8, %c0_10] : memref<9x256xf32, #tpu.memory_space<vmem>>, vector<1x256xf32>
    %32 = vector.broadcast %31 : vector<1x256xf32> to vector<8x256xf32>
    %33 = arith.mulf %30, %32 : vector<8x256xf32>
    %34 = tpu.concatenate %5, %9, %13, %17, %1, %21, %25, %29, %33 in 0 : vector<8x256xf32>, vector<8x256xf32>, vector<8x256xf32>, vector<8x256xf32>, vector<8x256xf32>, vector<8x256xf32>, vector<8x256xf32>, vector<8x256xf32>, vector<8x256xf32> -> vector<72x256xf32>
    %35 = arith.truncf %34 : vector<72x256xf32> to vector<72x256xbf16>
    %c0_11 = arith.constant 0 : index
    %c0_12 = arith.constant 0 : index
    %36 = vector.load %arg2[%c0_11, %c0_12] : memref<16x72xbf16, #tpu.memory_space<vmem>>, vector<16x72xbf16>
    %cst = arith.constant dense<0.000000e+00> : vector<16x256xf32>
    %37 = tpu.matmul %36, %35, %cst {dimension_numbers = #tpu.dot_dimension_numbers<[1], [0], [0], [1], [0, 0, 1, 1], [], []>} : vector<16x72xbf16>, vector<72x256xbf16>, vector<16x256xf32> -> vector<16x256xf32>
    %c0_13 = arith.constant 0 : index
    %c0_14 = arith.constant 0 : index
    %c0_15 = arith.constant 0 : index
    %38 = vector.load %arg4[%c0_13, %c0_14, %c0_15] : memref<1x16x256xf32, #tpu.memory_space<vmem>>, vector<1x16x256xf32>
    %39 = vector.shape_cast %38 : vector<1x16x256xf32> to vector<16x256xf32>
    %40 = vector.shape_cast %37 : vector<16x256xf32> to vector<1x16x256xf32>
    tpu.vector_store %arg4[%c0_13, %c0_14, %c0_15], %40 {strides = array<i32>} : memref<1x16x256xf32, #tpu.memory_space<vmem>>, vector<1x16x256xf32>,
    return
  }
  func.func @transform_0(%arg0: i32) -> (i32, i32, i32) {
    %c0_i32 = arith.constant 0 : i32
    %c0_i32_0 = arith.constant 0 : i32
    %c0_i32_1 = arith.constant 0 : i32
    return %arg0, %c0_i32, %c0_i32_0 : i32, i32, i32
  }
  func.func @transform_1(%arg0: i32) -> (i32, i32) {
    %c0_i32 = arith.constant 0 : i32
    %c0_i32_0 = arith.constant 0 : i32
    %c0_i32_1 = arith.constant 0 : i32
    return %c0_i32, %c0_i32_0 : i32, i32
  }
  func.func @transform_2(%arg0: i32) -> (i32, i32) {
    %c0_i32 = arith.constant 0 : i32
    %c0_i32_0 = arith.constant 0 : i32
    %c0_i32_1 = arith.constant 0 : i32
    return %c0_i32, %c0_i32_0 : i32, i32
  }
  func.func @transform_3(%arg0: i32) -> (i32, i32, i32) {
    %c0_i32 = arith.constant 0 : i32
    %c0_i32_0 = arith.constant 0 : i32
    %c0_i32_1 = arith.constant 0 : i32
    return %arg0, %c0_i32, %c0_i32_0 : i32, i32, i32
  }
}

</mosaic_0001>

<bundles_post_ra>
// kernel: tpu_custom_call.1
= control target key start
LH: loop header
LB: loop body
LE: loop exit
PB: predicated region body
PF: predicated region fallthrough
CT: control target
= control target key end

     0   :  { %8 = vsyncpa [#allocation3], 0  ;;  %s1007_s0 = inlined_call_operand.hbm [shape: f32[2,8,256], index: 0, kind: input, shape index: {}]   ;;  %s1008_s1 = inlined_call_operand.hbm [shape: bf16[16,72], index: 1, kind: input, shape index: {}]   ;;  %s1009_s2 = inlined_call_operand.hbm [shape: f32[9,256], index: 2, kind: input, shape index: {}]   ;;  %s1010_s3 = inlined_call_operand.hbm [shape: f32[2,16,256], index: 3, kind: output, shape index: {}]  }
   0x1   :  { %10 = vsyncpa [#allocation3 + $0x1], 0 }
   0x2   :  { %11 = vsyncpa [#allocation6], 0 }
   0x3   :  { %12 = vsyncpa [#allocation4], 0 }
   0x4   :  { %14 = vsyncpa [#allocation4 + $0x1], 0  ;;  %s826_s12 = smov 0   ;;  %s828_s13 = smov 0  }
   0x5   :  { %s830_s14 = smov 0   ;;  %s832_s15 = smov 0  }
   0x6 LB: > { %s130_s18 = sshll.u32 %s1008_s1, 4  ;;  %s850_s19 = sadd.s32 4294967295, %s789_s15   ;;  %s789_s15 = sphi %s832_s15, %s1021_s15   ;;  %s785_s14 = sphi %s830_s14, %s1020_s14   ;;  %s781_s13 = sphi %s828_s13, %s1019_s13   ;;  %s777_s12 = sphi %s826_s12, %s1018_s12   ;;  %s131_s18 = int_to_ptr.hbm [resolvable:$true] %s130_s18 }
   0x7   : > { %p523_p0 = scmp.ge.s32.totalorder %s789_s15, 1  ;;  %p41_p1 = scmp.eq.s32.totalorder %s850_s19, 0 }
   0x8   : > { %p119_p2 = scmp.lt.s32.totalorder %s789_s15, 3  ;;  %s791_s21 = smov [#allocation5]  }
   0x9   : > { %s132_s22 = sshll.u32 %s791_s21, 4  ;;  %s144_s25 = sshll.u32 %s1009_s2, 4  ;;  %s133_s22 = int_to_ptr.vmem [resolvable:$true] %s132_s22  ;;  %s145_s25 = int_to_ptr.hbm [resolvable:$true] %s144_s25 }
   0xa   : > { %p855_p3 = pnand %p523_p0, %p119_p2  ;;  %s792_s26 = smov [#allocation7]  }
   0xb   : > { %s146_s27 = sshll.u32 %s792_s26, 4  ;;  %s793_s28 = smov 64   ;;  %s147_s27 = int_to_ptr.vmem [resolvable:$true] %s146_s27 }
   0xc   : > { %p561_p4 = pneg %p855_p3  ;;  %s794_s29 = smov 4  }
   0xd   : > { %s795_s30 = smov 256   ;;  %s796_s4 = smov 16  }
   0xe   : > { %p562_p6 = pnand %p561_p4, %p41_p1  ;;  %s522_s5 = sadd.s32 4294967294, %s789_s15  }
   0xf   : > { %s869_s6 = sadd.s32 1, %s789_s15   ;;  %s27_s8 = sadd.s32 1, %s785_s14 }
  0x10   : > { %564 = dma.hbm_to_vmem [thread:$0]  (!%p562_p6), %s131_s18, 128, %s133_s22, [#allocation6], %s793_s28, %s793_s28, %s794_s29  }
  0x11   : > { %567 = dma.hbm_to_vmem [thread:$0]  (!%p562_p6), %s145_s25, 512, %s147_s27, [#allocation6], %s795_s30, %s795_s30, %s796_s4  }
  0x12   : > { %s24_s7 = ssub.s32 %s789_s15, %s869_s6  ;;  %p34_p8 = scmp.ne.s32.totalorder %s785_s14, %s781_s13 }
  0x13   : > { %p25_p7 = scmp.eq.s32.totalorder %s24_s7, 0  ;;  %p35_p9 = scmp.eq.s32.totalorder %s789_s15, 0 }
  0x14   : > { %p40_p10 = scmp.ne.s32.totalorder %s781_s13, %s777_s12  ;;  %p106_p13 = scmp.eq.s32.totalorder %s850_s19, 1 }
  0x15   : > { %s880_s9 = scalar_select %p25_p7, %s785_s14, %s27_s8  }
  0x16   : > { %p882_p11 = por %p35_p9, %p34_p8  ;;  %p888_p12 = por %p41_p1, %p40_p10 }
  0x17   : > { %p112_p0 = scmp.eq.s32.totalorder %s522_s5, 1  ;;  %p578_p2 = scmp.lt.s32.totalorder %s789_s15, 2 }
  0x18   : > { %s160_s16 = sand.u32 1, %s785_s14   ;;  %p895_p4 = por %p106_p13, %p34_p8 }
  0x19   : > { %p899_p6 = por %p112_p0, %p40_p10  ;;  %s527_s21 = sshll.u32 %s160_s16, 4 }
  0x1a   : > { %s546_s22 = sshll.u32 %s789_s15, 4  ;;  %s164_s26 = scalar_lea.vmem [#allocation2], %s527_s21 }
  0x1b   : > { %s169_s25 = scalar_lea.hbm %s1007_s0, %s546_s22  ;;  %s173_s27 = sshll.u32 %s164_s26, 4  ;;  %s174_s27 = int_to_ptr.vmem [resolvable:$true] %s173_s27 }
  0x1c   : > { %s171_s28 = sshll.u32 %s169_s25, 4  ;;  %p909_p7 = pnand %p578_p2, %p882_p11  ;;  %s172_s28 = int_to_ptr.hbm [resolvable:$true] %s171_s28 }
  0x1d   : > { %s161_s30 = scalar_lea.sflag [#allocation3], %s160_s16  ;;  %s689_s4 = sshra.s32 %s172_s28, 4  ;;  %s690_s4 = int_to_ptr.hbm [resolvable:$true] %s689_s4 }
  0x1e   : > { %s691_s5 = scalar_lea.hbm %s690_s4, 16  ;;  %p693_p9 = pneg %p909_p7 }
  0x1f   : > { %p692_p8 = scmp.ne.s32.totalorder %s690_s4, %s691_s5  ;;  %s696_s21 = scalar_lea.hbm %s1007_s0, 32 }
  0x20   : > { %p697_p11 = scmp.lt.s32.totalorder %s690_s4, %s1007_s0  ;;  %p698_p0 = scmp.lt.s32.totalorder %s696_s21, %s691_s5 }
  0x21   : > { %p694_p10 = pnand %p693_p9, %p692_p8 }
  0x22   : > { %p699_p2 = por %p698_p0, %p697_p11 }
  0x23   : > { %p695_p13 = pneg %p694_p10 }
  0x25   : > { %p700_p5 = pnand %p699_p2, %p695_p13 }
  0x27   : > { %703 = shalt.err (!%p700_p5)
}
  0x28   : > { %571 = dma.hbm_to_vmem [thread:$0]  (!%p909_p7), %s172_s28, 256, %s174_s27, %s161_s30  }
  0x29   : > { %182 = sbr.rel (%p855_p3) target bundleno = 352 (0x160), region = 32  ;;  %s926_s16 = sand.u32 (!%p855_p3), 1, %s781_s13  }
  0x2a   : > { %s531_s23 = sshll.u32 (!%p855_p3), %s926_s16, 4  ;;  %s185_s24 = scalar_lea.sflag (!%p855_p3), [#allocation3], %s926_s16 }
  0x2b   : > { %s188_s25 = scalar_lea.vmem (!%p855_p3), [#allocation2], %s531_s23 }
  0x2e   : > { %764 = dma.done.wait (%p888_p12), %s185_s24, 256  }
  0x2f   : > { %766 = vsyncadd (%p888_p12), %s185_s24, 4294967040 }
  0x30   : > { %768 = dma.done.wait (%p41_p1), [#allocation6], 640  }
  0x31   : > { %770 = vsyncadd (%p41_p1), [#allocation6], 4294966656  ;;  %v938_v0 = vld [vmem:[%s188_s25] sm:$0xff]  ;;  %s797_s20 = smov 113   ;;  %s798_s26 = smov 111   ;;  %v943_v1 = vld [vmem:[%s188_s25 + $0x8] sm:$0xff]  ;;  %v229_v3 = vlaneseq }
  0x32   : > { %306 = vrot.lane.b32.xlu1 %v938_v0, %s797_s20  ;;  %338 = vrot.lane.b32.xlu0 %v938_v0, %s798_s26  ;;  %s799_s27 = smov 112   ;;  %s800_s11 = smov 127   ;;  %v346_v8 = vld [vmem:[#allocation7 + $0x10] ss:$8 sm:$0x3]  ;;  %vm375_vm3 = vcmask 1043456  }
  0x33   : > { %322 = vrot.lane.b32.xlu2 %v938_v0, %s799_s27  ;;  %s801_s28 = smov 15   ;;  %s802_s29 = smov 1   ;;  %v960_v6 = vand.u32 127, %v229_v3  ;;  %v330_v9 = vld [vmem:[#allocation7 + $0x7] ss:$8 sm:$0x3] }
  0x34   : > { %s803_s30 = smov 17   ;;  %s804_s4 = smov 16   ;;  %v314_v10 = vld [vmem:[#allocation7 + $0x6] ss:$8 sm:$0x3]  ;;  %v348_v11 = vperm.slane %v346_v8, 0 }
  0x35   : > { %vm326_vm0 = vcmp.lt.s32.totalorder %v960_v6, 112  ;;  %vm342_vm1 = vcmp.lt.s32.totalorder %v960_v6, 111  ;;  %v349_v12 = vperm.slane %v346_v8, 1  ;;  %vm310_vm2 = vcmp.lt.s32.totalorder %v960_v6, 113  ;;  %s534_s5 = sshll.u32 %s926_s16, 5  ;;  %s548_s7 = sshll.u32 %s850_s19, 5 }
  0x36   : > { %v332_v13 = vperm.slane %v330_v9, 0  ;;  %v333_v14 = vperm.slane %v330_v9, 1  ;;  %v316_v15 = vperm.slane %v314_v10, 0  ;;  %v317_v16 = vperm.slane %v314_v10, 1  ;;  %s221_s8 = scalar_lea.vmem [#allocation8], %s534_s5  ;;  %s426_s10 = scalar_lea.hbm %s1010_s3, %s548_s7 }
  0x37   : > { %v298_v27 = vld [vmem:[#allocation7 + $0x5] ss:$8 sm:$0x3]  ;;  %vm294_vm4 = vcmp.lt.s32.totalorder %v960_v6, 127  ;;  %vm278_vm5 = vcmp.lt.s32.totalorder %v960_v6, 1  ;;  %vm262_vm6 = vcmp.lt.s32.totalorder %v960_v6, 15 }
  0x38   : > { %v300_v37 = vperm.slane %v298_v27, 0  ;;  %v301_v38 = vperm.slane %v298_v27, 1  ;;  %v282_v47 = vld [vmem:[#allocation7 + $0x3] ss:$8 sm:$0x3]  ;;  %vm231_vm7 = vcmp.lt.s32.totalorder %v960_v6, 17 }
  0x39   : > { %v266_v48 = vld [vmem:[#allocation7 + $0x2] ss:$8 sm:$0x3]  ;;  %v284_v51 = vperm.slane %v282_v47, 0  ;;  %v285_v53 = vperm.slane %v282_v47, 1  ;;  %vm246_vm8 = vcmp.lt.s32.totalorder %v960_v6, 16 }
  0x3a   : > { %308 = vrot.lane.b32.xlu1 %v943_v1, %s797_s20  ;;  %340 = vrot.lane.b32.xlu0 %v943_v1, %s798_s26  ;;  %v268_v54 = vperm.slane %v266_v48, 0  ;;  %v269_v55 = vperm.slane %v266_v48, 1  ;;  %vm371_vm9 = vcmask 588800   ;;  %s427_s23 = sshll.u32 %s221_s8, 4  ;;  %s429_s24 = sshll.u32 %s426_s10, 4  ;;  %s428_s23 = int_to_ptr.vmem [resolvable:$true] %s427_s23  ;;  %s430_s24 = int_to_ptr.hbm [resolvable:$true] %s429_s24 }
  0x3b   : > { %324 = vrot.lane.b32.xlu2 %v943_v1, %s799_s27  ;;  %s415_s25 = scalar_lea.sflag [#allocation4], %s926_s16  ;;  %s733_s19 = sshra.s32 %s430_s24, 4  ;;  %s734_s19 = int_to_ptr.hbm [resolvable:$true] %s733_s19 }
  0x3c   : > { %s735_s20 = scalar_lea.hbm %s734_s19, 32  ;;  %p740_p12 = scmp.lt.s32.totalorder %s734_s19, %s1010_s3 }
  0x3d   : > { %p736_p1 = scmp.ne.s32.totalorder %s734_s19, %s735_s20 }
  0x3f   : > { %p737_p3 = pnand %p736_p1, %p895_p4 }
  0x41   : > { %p738_p5 = pneg %p737_p3 }
  0x42   : > { %292 = vrot.lane.b32.xlu1 %v943_v1, %s800_s11  ;;  %290 = vrot.lane.b32.xlu0 %v938_v0, %s800_s11  ;;  %s739_s11 = scalar_lea.hbm %s1010_s3, 64 }
  0x43   : > { %258 = vrot.lane.b32.xlu2 %v938_v0, %s801_s28  ;;  %p741_p7 = scmp.lt.s32.totalorder %s739_s11, %s735_s20 }
  0x45   : > { %p742_p8 = por %p741_p7, %p740_p12 }
  0x47   : > { %p743_p9 = pnand %p742_p8, %p738_p5 }
  0x4a   : > { %274 = vrot.lane.b32.xlu1 %v938_v0, %s802_s29  ;;  %260 = vrot.lane.b32.xlu0 %v943_v1, %s801_s28 }
  0x4b   : > { %276 = vrot.lane.b32.xlu2 %v943_v1, %s802_s29 }
  0x52   : > { %227 = vrot.lane.b32.xlu1 %v943_v1, %s803_s30  ;;  %225 = vrot.lane.b32.xlu0 %v938_v0, %s803_s30 }
  0x53   : > { %242 = vrot.lane.b32.xlu2 %v938_v0, %s804_s4 }
  0x5a   : > { %244 = vrot.lane.b32.xlu0 %v943_v1, %s804_s4 }
  0x8d   : > { %v323_v2 = vpop.permute.xlu2 %322 }
  0x95   : > { %v325_v7 = vpop.permute.xlu2 %324 }
  0x96   : > { %v327_v19 = vsel %vm326_vm0, %v323_v2, %v325_v7  ;;  %v328_v20 = vsel %vm326_vm0, %v325_v7, %v323_v2  ;;  %v250_v7 = vld [vmem:[#allocation7 + $0x1] ss:$8 sm:$0x3] }
  0x97   : > { %v336_v31 = vmul.f32 %v332_v13, %v327_v19  ;;  %v337_v32 = vmul.f32 %v333_v14, %v328_v20  ;;  %v253_v13 = vperm.slane %v250_v7, 1 }
  0x9d   : > { %v259_v30 = vpop.permute.xlu2 %258 }
  0xa4   : > { %v307_v4 = vpop.permute.xlu1 %306  ;;  %v339_v5 = vpop.permute.xlu0 %338 }
  0xa5   : > { %v277_v52 = vpop.permute.xlu2 %276 }
  0xac   : > { %v309_v17 = vpop.permute.xlu1 %308  ;;  %v341_v18 = vpop.permute.xlu0 %340 }
  0xad   : > { %v343_v21 = vsel %vm342_vm1, %v339_v5, %v341_v18  ;;  %v344_v22 = vsel %vm342_vm1, %v341_v18, %v339_v5  ;;  %v311_v23 = vsel %vm310_vm2, %v307_v4, %v309_v17  ;;  %v312_v24 = vsel %vm310_vm2, %v309_v17, %v307_v4  ;;  %v234_v5 = vld [vmem:[#allocation7] ss:$8 sm:$0x3] }
  0xae   : > { %v352_v25 = vmul.f32 %v348_v11, %v343_v21  ;;  %v353_v26 = vmul.f32 %v349_v12, %v344_v22  ;;  %v320_v33 = vmul.f32 %v316_v15, %v311_v23  ;;  %v321_v34 = vmul.f32 %v317_v16, %v312_v24  ;;  %v243_v11 = vpop.permute.xlu2 %242 }
  0xaf   : > { %v236_v9 = vperm.slane %v234_v5, 0  ;;  %v237_v10 = vperm.slane %v234_v5, 1  ;;  %v252_v12 = vperm.slane %v250_v7, 0 }
  0xb0   : > { %v362_v28 = vpack.c.bf16 %v352_v25, %v352_v25  ;;  %v363_v29 = vpack.c.bf16 %v353_v26, %v353_v26  ;;  %v360_v43 = vpack.c.bf16 %v336_v31, %v320_v33  ;;  %v361_v44 = vpack.c.bf16 %v337_v32, %v321_v34  ;;  %v547_v25 = vld [vmem:[#allocation5] sm:$0xff] }
  0xb2   : > { %v377_v35 = vsel %vm375_vm3, %v362_v28, 0  ;;  %v380_v36 = vsel %vm375_vm3, %v363_v29, 0 }
  0xb3   : > { %385 = vmatpush.bf16.msra.mxu0 %v377_v35  ;;  %399 = vmatpush.bf16.msra.mxu1 %v380_v36 }
  0xb4   : > { %v293_v39 = vpop.permute.xlu1 %292  ;;  %v291_v40 = vpop.permute.xlu0 %290 }
  0xb5   : > { %v295_v41 = vsel %vm294_vm4, %v291_v40, %v293_v39  ;;  %v296_v42 = vsel %vm294_vm4, %v293_v39, %v291_v40 }
  0xb6   : > { %v304_v45 = vmul.f32 %v300_v37, %v295_v41  ;;  %v305_v46 = vmul.f32 %v301_v38, %v296_v42 }
  0xb7   : > { %386 = vmatpush.bf16.msra.mxu0 %v360_v43  ;;  %400 = vmatpush.bf16.msra.mxu1 %v361_v44 }
  0xb8   : > { %v358_v49 = vpack.c.bf16 %v304_v45, %v938_v0  ;;  %v359_v50 = vpack.c.bf16 %v305_v46, %v943_v1 }
  0xbb   : > { %387 = vmatpush.bf16.msra.mxu0 %v358_v49  ;;  %401 = vmatpush.bf16.msra.mxu1 %v359_v50 }
  0xbc   : > { %v275_v56 = vpop.permute.xlu1 %274  ;;  %v261_v57 = vpop.permute.xlu0 %260 }
  0xbd   : > { %v279_v58 = vsel %vm278_vm5, %v275_v56, %v277_v52  ;;  %v280_v59 = vsel %vm278_vm5, %v277_v52, %v275_v56  ;;  %v263_v60 = vsel %vm262_vm6, %v259_v30, %v261_v57  ;;  %v264_v61 = vsel %vm262_vm6, %v261_v57, %v259_v30 }
  0xbe   : > { %v288_v62 = vmul.f32 %v284_v51, %v280_v59  ;;  %v289_v63 = vmul.f32 %v285_v53, %v279_v58  ;;  %v272_v0 = vmul.f32 %v268_v54, %v264_v61  ;;  %v273_v1 = vmul.f32 %v269_v55, %v263_v60 }
  0xc0   : > { %v356_v2 = vpack.c.bf16 %v288_v62, %v272_v0  ;;  %v357_v3 = vpack.c.bf16 %v289_v63, %v273_v1 }
  0xc2   : > { %388 = vmatpush.bf16.msra.mxu0 %v356_v2  ;;  %402 = vmatpush.bf16.msra.mxu1 %v357_v3 }
  0xc4   : > { %v226_v4 = vpop.permute.xlu0 %225  ;;  %v228_v8 = vpop.permute.xlu1 %227 }
  0xc5   : > { %v232_v14 = vsel %vm231_vm7, %v226_v4, %v228_v8  ;;  %v233_v15 = vsel %vm231_vm7, %v228_v8, %v226_v4 }
  0xc6   : > { %v240_v19 = vmul.f32 %v236_v9, %v233_v15  ;;  %v241_v20 = vmul.f32 %v237_v10, %v232_v14 }
  0xcc   : > { %v245_v16 = vpop.permute.xlu0 %244 }
  0xcd   : > { %v247_v17 = vsel %vm246_vm8, %v243_v11, %v245_v16  ;;  %v248_v18 = vsel %vm246_vm8, %v245_v16, %v243_v11 }
  0xce   : > { %v256_v21 = vmul.f32 %v252_v12, %v248_v18  ;;  %v257_v22 = vmul.f32 %v253_v13, %v247_v17 }
  0xd0   : > { %v354_v23 = vpack.c.bf16 %v256_v21, %v240_v19  ;;  %v355_v24 = vpack.c.bf16 %v257_v22, %v241_v20 }
  0xd2   : > { %389 = vmatpush.bf16.msra.mxu0 %v354_v23  ;;  %403 = vmatpush.bf16.msra.mxu1 %v355_v24 }
  0xd5   : > { %539 = vmatmul.msk.bf16.vlgmr.msra.gmra.mxu0 %vm371_vm9, %v547_v25  ;;  %540 = vmatmul.msk.bf16.vlgmr.msra.gmra.mxu1 %vm371_vm9, %v547_v25 }
 0x152   : > { %v391_v6 = vpop.f32.mrf.mxu0  ;;  %v405_v26 = vpop.f32.mrf.mxu1 }
 0x153   : > { %410 = vst [vmem:[%s221_s8] sm:$0xff] %v391_v6 }
 0x154   : > { %411 = vst [vmem:[%s221_s8 + $0x8] sm:$0xff] %v405_v26 }
 0x15a   : > { %v393_v27 = vpop.f32.mrf.mxu0  ;;  %v407_v28 = vpop.f32.mrf.mxu1 }
 0x15b   : > { %412 = vst [vmem:[%s221_s8 + $0x10] sm:$0xff] %v393_v27 }
 0x15c   : > { %413 = vst [vmem:[%s221_s8 + $0x18] sm:$0xff] %v407_v28 }
 0x15d   : > { %746 = shalt.err (!%p743_p9)
}
 0x15e   : > { %s805_s16 = smov 256  }
 0x15f   : > { %559 = dma.vmem_to_hbm [thread:$0]  (%p895_p4), %s428_s23, 512, %s430_s24, %s415_s25, %s805_s16, %s805_s16, %s804_s4  }
 0x160 PF: > { %s444_s30 = sand.u32 1, %s777_s12   ;;  %p1017_p10 = scmp.ge.s32.totalorder %s789_s15, 2 }
 0x161   : > { %s445_s5 = scalar_lea.sflag [#allocation4], %s444_s30 }
 0x162   : > { %p573_p13 = pnand %p1017_p10, %p899_p6 }
 0x164   : > { %p574_p11 = pneg %p573_p13 }
 0x166   : > { %772 = dma.done.wait (%p574_p11), %s445_s5, 512  }
 0x167   : > { %774 = vsyncadd (%p574_p11), %s445_s5, 4294966784  ;;  %p17_p0 = scmp.ge.s32.totalorder %s869_s6, 4   ;;  %s1018_s12 = smov %s781_s13 }
 0x168   : > { %s1019_s13 = smov %s785_s14  ;;  %s1020_s14 = smov %s880_s9 }
 0x169   : > { %s1021_s15 = smov %s869_s6  ;;  %19 = sbr.rel (!%p17_p0) target bundleno = 6 (0x6), region = 92 }
 0x16e   :  { %451 = vsyncpa [#allocation3], 1 }
 0x16f   :  { %453 = vsyncpa [#allocation3 + $0x1], 1 }
 0x170   :  { %454 = vsyncpa [#allocation6], 1 }
 0x171   :  { %455 = vsyncpa [#allocation4], 1 }
 0x172   :  { %457 = vsyncpa [#allocation4 + $0x1], 1 }

</bundles_post_ra>
